<compile_context>
chip_gen: v7x
topology: tpu7x:2x2x1
jax: 0.10.0
libtpu: 0.0.40
codegen_flags: <defaults>
</compile_context>

<pallas_src>
import jax
import jax.numpy as jnp
from jax.experimental import pallas as pl
from jax.experimental.pallas import tpu as pltpu

EPS = 1e-5  # torch.nn.LayerNorm default eps


def _to_vector_kernel(x_ref, g1_ref, be1_ref, w1_ref, b1_ref,
                      g2_ref, be2_ref, w2_ref, b2_ref, o_ref):
    # x_ref block: (TB, U, D) for the current batch tile.
    x = x_ref[...].astype(jnp.float32)                          # (TB, U, D)

    # ---- LayerNorm over features (biased variance, eps=1e-5) + ReLU (f32) ----
    mu = jnp.mean(x, axis=-1, keepdims=True)                    # (TB, U, 1)
    var = jnp.mean((x - mu) ** 2, axis=-1, keepdims=True)
    xn = (x - mu) * jax.lax.rsqrt(var + EPS)
    xn = xn * g1_ref[...] + be1_ref[...]                        # bcast (1, D)
    xn = jnp.maximum(xn, 0.0)

    # ---- Unit-mean folded through Linear1 (exact algebraic identity) ----
    m = jnp.mean(xn, axis=1)                                    # (TB, D)
    h = jnp.dot(m.astype(jnp.bfloat16), w1_ref[...],
                preferred_element_type=jnp.float32)             # (TB, H)
    h = h + b1_ref[...]

    # ---- LayerNorm over hidden + ReLU (f32) ----
    mu2 = jnp.mean(h, axis=-1, keepdims=True)
    var2 = jnp.mean((h - mu2) ** 2, axis=-1, keepdims=True)
    hn = (h - mu2) * jax.lax.rsqrt(var2 + EPS)
    hn = hn * g2_ref[...] + be2_ref[...]
    hn = jnp.maximum(hn, 0.0)

    # ---- Linear 2: (TB, H) @ (H, O_pad) + b2 (lane-dense output) ----
    out = jnp.dot(hn.astype(jnp.bfloat16), w2_ref[...],
                  preferred_element_type=jnp.float32)
    out = out + b2_ref[...]                                     # (TB, O_pad)

    o_ref[...] = out.astype(o_ref.dtype)


def to_vector(x, params, *, tb=128):
    """x: (B, U, D) float32.  params: w1/w2 bf16 (in,out); LN params/biases f32."""
    B, U, D = x.shape
    H = params["w1"].shape[1]
    O = params["w2"].shape[1]

    # Lane-dense output: pad output features up to a multiple of 128 lanes.
    o_pad = ((O + 127) // 128) * 128
    w2 = params["w2"]
    b2 = params["b2"]
    if o_pad != O:
        w2 = jnp.pad(w2, ((0, 0), (0, o_pad - O)))
        b2 = jnp.pad(b2, ((0, 0), (0, o_pad - O)))

    # Batch tile: multiple of 8 sublanes, or the whole batch if it is small.
    if tb >= B:
        tb = B
    else:
        tb = max(8, (tb // 8) * 8)
    nb = pl.cdiv(B, tb)

    # Grid-invariant operands (weights / LN params): constant index_map, so
    # they are DMA'd once and stay resident across the batch-tile grid.
    full = lambda shape: pl.BlockSpec(shape, lambda b: (0,) * len(shape))

    out_padded = pl.pallas_call(
        _to_vector_kernel,
        out_shape=jax.ShapeDtypeStruct((B, o_pad), jnp.float32),
        grid_spec=pl.GridSpec(
            grid=(nb,),
            in_specs=[
                pl.BlockSpec((tb, U, D), lambda b: (b, 0, 0)),  # x (batch-tiled)
                full((1, D)),      # gamma1
                full((1, D)),      # beta1
                full((D, H)),      # w1 (bf16)
                full((1, H)),      # b1
                full((1, H)),      # gamma2
                full((1, H)),      # beta2
                full((H, o_pad)),  # w2 (bf16, lane-padded)
                full((1, o_pad)),  # b2 (lane-padded)
            ],
            out_specs=pl.BlockSpec((tb, o_pad), lambda b: (b, 0)),
        ),
        compiler_params=pltpu.CompilerParams(
            dimension_semantics=("parallel",),   # shard batch tiles across TCs
            vmem_limit_bytes=32 * 1024 * 1024,   # explicit; safe on v5e/v6e/v7x
        ),
    )(x, params["g1"], params["be1"], params["w1"], params["b1"],
      params["g2"], params["be2"], w2, b2)

    return out_padded[:, :O]


def _reference(x, p):
    """Plain-JAX f32 reference following the PyTorch op order exactly."""
    w1 = p["w1"].astype(jnp.float32)
    w2 = p["w2"].astype(jnp.float32)
    mu = jnp.mean(x, -1, keepdims=True)
    var = jnp.mean((x - mu) ** 2, -1, keepdims=True)
    xn = (x - mu) / jnp.sqrt(var + EPS) * p["g1"][0] + p["be1"][0]
    xn = jnp.maximum(xn, 0.0)
    h = xn @ w1 + p["b1"][0]          # per-unit Linear1, exactly as the module
    m = jnp.mean(h, axis=1)           # mean over units AFTER the linear
    mu2 = jnp.mean(m, -1, keepdims=True)
    var2 = jnp.mean((m - mu2) ** 2, -1, keepdims=True)
    mn = (m - mu2) / jnp.sqrt(var2 + EPS) * p["g2"][0] + p["be2"][0]
    mn = jnp.maximum(mn, 0.0)
    return mn @ w2 + p["b2"][0]


if __name__ == "__main__":
    # Small shapes: B batch, U units, D input_dim, H hidden, O output_dim.
    B, U, D, H, O = 16, 8, 32, 128, 16

    key = jax.random.PRNGKey(0)
    kx, kw1, kb1, kw2, kb2, kg1, kbe1, kg2, kbe2 = jax.random.split(key, 9)

    x = jax.random.normal(kx, (B, U, D), dtype=jnp.float32)

    params = {
        # LayerNorm affine params, shape (1, dim) for TPU layout, f32.
        "g1": 1.0 + 0.1 * jax.random.normal(kg1, (1, D), jnp.float32),
        "be1": 0.1 * jax.random.normal(kbe1, (1, D), jnp.float32),
        "g2": 1.0 + 0.1 * jax.random.normal(kg2, (1, H), jnp.float32),
        "be2": 0.1 * jax.random.normal(kbe2, (1, H), jnp.float32),
        # Linear weights stored (in, out); bf16 for MXU-native matmuls.
        "w1": (jax.random.normal(kw1, (D, H), jnp.float32)
               / jnp.sqrt(D)).astype(jnp.bfloat16),
        "b1": 0.01 * jax.random.normal(kb1, (1, H), jnp.float32),
        "w2": (jax.random.normal(kw2, (H, O), jnp.float32)
               / jnp.sqrt(H)).astype(jnp.bfloat16),
        "b2": 0.01 * jax.random.normal(kb2, (1, O), jnp.float32),
    }

    out = to_vector(x, params, tb=8)   # tb=8 -> grid of 2 batch tiles
    out = jax.block_until_ready(out)

    ref = _reference(x, params)
    assert out.shape == (B, O)
    # Kernel uses bf16 matmul operands (f32 accumulation); the f32 reference
    # differs only by that quantization + the exact mean-through-Linear1 fold.
    assert jnp.allclose(out, ref, atol=1e-2, rtol=1e-2), \
        float(jnp.max(jnp.abs(out - ref)))

    print("KERNEL_OK")
</pallas_src>

<mosaic_0001>
module attributes {stable_mosaic.version = 11 : i64} {
  func.func @_to_vector_kernel(%arg0: i32, %arg1: memref<8x8x32xf32, #tpu.memory_space<vmem>>, %arg2: memref<1x32xf32, #tpu.memory_space<vmem>>, %arg3: memref<1x32xf32, #tpu.memory_space<vmem>>, %arg4: memref<32x128xbf16, #tpu.memory_space<vmem>>, %arg5: memref<1x128xf32, #tpu.memory_space<vmem>>, %arg6: memref<1x128xf32, #tpu.memory_space<vmem>>, %arg7: memref<1x128xf32, #tpu.memory_space<vmem>>, %arg8: memref<128x128xbf16, #tpu.memory_space<vmem>>, %arg9: memref<1x128xf32, #tpu.memory_space<vmem>>, %arg10: memref<8x128xf32, #tpu.memory_space<vmem>>) attributes {dimension_semantics = [#tpu.dimension_semantics<parallel>], iteration_bounds = array<i64: 2>, scalar_prefetch = 0 : i64, scratch_operands = 0 : i64, tpu.core_type = #tpu.core_type<tc>, window_params = [{transform_indices = @transform_0, window_bounds = array<i64: 8, 8, 32>}, {pipeline_mode = #tpu.pipeline_mode<synchronous>, transform_indices = @transform_1, window_bounds = array<i64: 1, 32>}, {pipeline_mode = #tpu.pipeline_mode<synchronous>, transform_indices = @transform_2, window_bounds = array<i64: 1, 32>}, {pipeline_mode = #tpu.pipeline_mode<synchronous>, transform_indices = @transform_3, window_bounds = array<i64: 32, 128>}, {pipeline_mode = #tpu.pipeline_mode<synchronous>, transform_indices = @transform_4, window_bounds = array<i64: 1, 128>}, {pipeline_mode = #tpu.pipeline_mode<synchronous>, transform_indices = @transform_5, window_bounds = array<i64: 1, 128>}, {pipeline_mode = #tpu.pipeline_mode<synchronous>, transform_indices = @transform_6, window_bounds = array<i64: 1, 128>}, {pipeline_mode = #tpu.pipeline_mode<synchronous>, transform_indices = @transform_7, window_bounds = array<i64: 128, 128>}, {pipeline_mode = #tpu.pipeline_mode<synchronous>, transform_indices = @transform_8, window_bounds = array<i64: 1, 128>}, {transform_indices = @transform_9, window_bounds = array<i64: 8, 128>}]} {
    %c0 = arith.constant 0 : index
    %c0_0 = arith.constant 0 : index
    %c0_1 = arith.constant 0 : index
    %0 = vector.load %arg1[%c0, %c0_0, %c0_1] : memref<8x8x32xf32, #tpu.memory_space<vmem>>, vector<8x8x32xf32>
    %cst = arith.constant dense<0.000000e+00> : vector<8x8xf32>
    %1 = vector.multi_reduction <add>, %0, %cst [2] : vector<8x8x32xf32> to vector<8x8xf32>
    %2 = vector.shape_cast %1 : vector<8x8xf32> to vector<8x8x1xf32>
    %cst_2 = arith.constant 3.200000e+01 : f32
    %3 = vector.broadcast %cst_2 : f32 to vector<8x8x1xf32>
    %4 = arith.divf %2, %3 : vector<8x8x1xf32>
    %5 = vector.broadcast %4 : vector<8x8x1xf32> to vector<8x8x32xf32>
    %6 = arith.subf %0, %5 : vector<8x8x32xf32>
    %7 = arith.mulf %6, %6 : vector<8x8x32xf32>
    %cst_3 = arith.constant dense<0.000000e+00> : vector<8x8xf32>
    %8 = vector.multi_reduction <add>, %7, %cst_3 [2] : vector<8x8x32xf32> to vector<8x8xf32>
    %9 = vector.shape_cast %8 : vector<8x8xf32> to vector<8x8x1xf32>
    %cst_4 = arith.constant 3.200000e+01 : f32
    %10 = vector.broadcast %cst_4 : f32 to vector<8x8x1xf32>
    %11 = arith.divf %9, %10 : vector<8x8x1xf32>
    %12 = vector.broadcast %4 : vector<8x8x1xf32> to vector<8x8x32xf32>
    %13 = arith.subf %0, %12 : vector<8x8x32xf32>
    %cst_5 = arith.constant 9.99999974E-6 : f32
    %14 = vector.broadcast %cst_5 : f32 to vector<8x8x1xf32>
    %15 = arith.addf %11, %14 : vector<8x8x1xf32>
    %16 = math.rsqrt %15 : vector<8x8x1xf32>
    %17 = vector.broadcast %16 : vector<8x8x1xf32> to vector<8x8x32xf32>
    %18 = arith.mulf %13, %17 : vector<8x8x32xf32>
    %c0_6 = arith.constant 0 : index
    %c0_7 = arith.constant 0 : index
    %19 = vector.load %arg2[%c0_6, %c0_7] : memref<1x32xf32, #tpu.memory_space<vmem>>, vector<1x32xf32>
    %20 = vector.shape_cast %19 : vector<1x32xf32> to vector<1x1x32xf32>
    %21 = vector.broadcast %20 : vector<1x1x32xf32> to vector<8x8x32xf32>
    %22 = arith.mulf %18, %21 : vector<8x8x32xf32>
    %c0_8 = arith.constant 0 : index
    %c0_9 = arith.constant 0 : index
    %23 = vector.load %arg3[%c0_8, %c0_9] : memref<1x32xf32, #tpu.memory_space<vmem>>, vector<1x32xf32>
    %24 = vector.shape_cast %23 : vector<1x32xf32> to vector<1x1x32xf32>
    %25 = vector.broadcast %24 : vector<1x1x32xf32> to vector<8x8x32xf32>
    %26 = arith.addf %22, %25 : vector<8x8x32xf32>
    %cst_10 = arith.constant 0.000000e+00 : f32
    %27 = vector.broadcast %cst_10 : f32 to vector<8x8x32xf32>
    %28 = arith.maximumf %26, %27 : vector<8x8x32xf32>
    %cst_11 = arith.constant dense<0.000000e+00> : vector<8x32xf32>
    %29 = vector.multi_reduction <add>, %28, %cst_11 [1] : vector<8x8x32xf32> to vector<8x32xf32>
    %cst_12 = arith.constant 8.000000e+00 : f32
    %30 = vector.broadcast %cst_12 : f32 to vector<8x32xf32>
    %31 = arith.divf %29, %30 : vector<8x32xf32>
    %32 = arith.truncf %31 : vector<8x32xf32> to vector<8x32xbf16>
    %c0_13 = arith.constant 0 : index
    %c0_14 = arith.constant 0 : index
    %33 = vector.load %arg4[%c0_13, %c0_14] : memref<32x128xbf16, #tpu.memory_space<vmem>>, vector<32x128xbf16>
    %cst_15 = arith.constant dense<0.000000e+00> : vector<8x128xf32>
    %34 = tpu.matmul %32, %33, %cst_15 {dimension_numbers = #tpu.dot_dimension_numbers<[1], [0], [0], [1], [0, 0, 1, 1], [], []>} : vector<8x32xbf16>, vector<32x128xbf16>, vector<8x128xf32> -> vector<8x128xf32>
    %c0_16 = arith.constant 0 : index
    %c0_17 = arith.constant 0 : index
    %35 = vector.load %arg5[%c0_16, %c0_17] : memref<1x128xf32, #tpu.memory_space<vmem>>, vector<1x128xf32>
    %36 = vector.broadcast %35 : vector<1x128xf32> to vector<8x128xf32>
    %37 = arith.addf %34, %36 : vector<8x128xf32>
    %cst_18 = arith.constant dense<0.000000e+00> : vector<8xf32>
    %38 = vector.multi_reduction <add>, %37, %cst_18 [1] : vector<8x128xf32> to vector<8xf32>
    %39 = vector.shape_cast %38 : vector<8xf32> to vector<8x1xf32>
    %cst_19 = arith.constant 1.280000e+02 : f32
    %40 = vector.broadcast %cst_19 : f32 to vector<8x1xf32>
    %41 = arith.divf %39, %40 : vector<8x1xf32>
    %42 = vector.broadcast %41 : vector<8x1xf32> to vector<8x128xf32>
    %43 = arith.subf %37, %42 : vector<8x128xf32>
    %44 = arith.mulf %43, %43 : vector<8x128xf32>
    %cst_20 = arith.constant dense<0.000000e+00> : vector<8xf32>
    %45 = vector.multi_reduction <add>, %44, %cst_20 [1] : vector<8x128xf32> to vector<8xf32>
    %46 = vector.shape_cast %45 : vector<8xf32> to vector<8x1xf32>
    %cst_21 = arith.constant 1.280000e+02 : f32
    %47 = vector.broadcast %cst_21 : f32 to vector<8x1xf32>
    %48 = arith.divf %46, %47 : vector<8x1xf32>
    %49 = vector.broadcast %41 : vector<8x1xf32> to vector<8x128xf32>
    %50 = arith.subf %37, %49 : vector<8x128xf32>
    %cst_22 = arith.constant 9.99999974E-6 : f32
    %51 = vector.broadcast %cst_22 : f32 to vector<8x1xf32>
    %52 = arith.addf %48, %51 : vector<8x1xf32>
    %53 = math.rsqrt %52 : vector<8x1xf32>
    %54 = vector.broadcast %53 : vector<8x1xf32> to vector<8x128xf32>
    %55 = arith.mulf %50, %54 : vector<8x128xf32>
    %c0_23 = arith.constant 0 : index
    %c0_24 = arith.constant 0 : index
    %56 = vector.load %arg6[%c0_23, %c0_24] : memref<1x128xf32, #tpu.memory_space<vmem>>, vector<1x128xf32>
    %57 = vector.broadcast %56 : vector<1x128xf32> to vector<8x128xf32>
    %58 = arith.mulf %55, %57 : vector<8x128xf32>
    %c0_25 = arith.constant 0 : index
    %c0_26 = arith.constant 0 : index
    %59 = vector.load %arg7[%c0_25, %c0_26] : memref<1x128xf32, #tpu.memory_space<vmem>>, vector<1x128xf32>
    %60 = vector.broadcast %59 : vector<1x128xf32> to vector<8x128xf32>
    %61 = arith.addf %58, %60 : vector<8x128xf32>
    %cst_27 = arith.constant 0.000000e+00 : f32
    %62 = vector.broadcast %cst_27 : f32 to vector<8x128xf32>
    %63 = arith.maximumf %61, %62 : vector<8x128xf32>
    %64 = arith.truncf %63 : vector<8x128xf32> to vector<8x128xbf16>
    %c0_28 = arith.constant 0 : index
    %c0_29 = arith.constant 0 : index
    %65 = vector.load %arg8[%c0_28, %c0_29] : memref<128x128xbf16, #tpu.memory_space<vmem>>, vector<128x128xbf16>
    %cst_30 = arith.constant dense<0.000000e+00> : vector<8x128xf32>
    %66 = tpu.matmul %64, %65, %cst_30 {dimension_numbers = #tpu.dot_dimension_numbers<[1], [0], [0], [1], [0, 0, 1, 1], [], []>} : vector<8x128xbf16>, vector<128x128xbf16>, vector<8x128xf32> -> vector<8x128xf32>
    %c0_31 = arith.constant 0 : index
    %c0_32 = arith.constant 0 : index
    %67 = vector.load %arg9[%c0_31, %c0_32] : memref<1x128xf32, #tpu.memory_space<vmem>>, vector<1x128xf32>
    %68 = vector.broadcast %67 : vector<1x128xf32> to vector<8x128xf32>
    %69 = arith.addf %66, %68 : vector<8x128xf32>
    %c0_33 = arith.constant 0 : index
    %c0_34 = arith.constant 0 : index
    %70 = vector.load %arg10[%c0_33, %c0_34] : memref<8x128xf32, #tpu.memory_space<vmem>>, vector<8x128xf32>
    tpu.vector_store %arg10[%c0_33, %c0_34], %69 {strides = array<i32>} : memref<8x128xf32, #tpu.memory_space<vmem>>, vector<8x128xf32>,
    return
  }
  func.func @transform_0(%arg0: i32) -> (i32, i32, i32) {
    %c0_i32 = arith.constant 0 : i32
    %c0_i32_0 = arith.constant 0 : i32
    %c0_i32_1 = arith.constant 0 : i32
    return %arg0, %c0_i32, %c0_i32_0 : i32, i32, i32
  }
  func.func @transform_1(%arg0: i32) -> (i32, i32) {
    %c0_i32 = arith.constant 0 : i32
    %c0_i32_0 = arith.constant 0 : i32
    %c0_i32_1 = arith.constant 0 : i32
    return %c0_i32, %c0_i32_0 : i32, i32
  }
  func.func @transform_2(%arg0: i32) -> (i32, i32) {
    %c0_i32 = arith.constant 0 : i32
    %c0_i32_0 = arith.constant 0 : i32
    %c0_i32_1 = arith.constant 0 : i32
    return %c0_i32, %c0_i32_0 : i32, i32
  }
  func.func @transform_3(%arg0: i32) -> (i32, i32) {
    %c0_i32 = arith.constant 0 : i32
    %c0_i32_0 = arith.constant 0 : i32
    %c0_i32_1 = arith.constant 0 : i32
    return %c0_i32, %c0_i32_0 : i32, i32
  }
  func.func @transform_4(%arg0: i32) -> (i32, i32) {
    %c0_i32 = arith.constant 0 : i32
    %c0_i32_0 = arith.constant 0 : i32
    %c0_i32_1 = arith.constant 0 : i32
    return %c0_i32, %c0_i32_0 : i32, i32
  }
  func.func @transform_5(%arg0: i32) -> (i32, i32) {
    %c0_i32 = arith.constant 0 : i32
    %c0_i32_0 = arith.constant 0 : i32
    %c0_i32_1 = arith.constant 0 : i32
    return %c0_i32, %c0_i32_0 : i32, i32
  }
  func.func @transform_6(%arg0: i32) -> (i32, i32) {
    %c0_i32 = arith.constant 0 : i32
    %c0_i32_0 = arith.constant 0 : i32
    %c0_i32_1 = arith.constant 0 : i32
    return %c0_i32, %c0_i32_0 : i32, i32
  }
  func.func @transform_7(%arg0: i32) -> (i32, i32) {
    %c0_i32 = arith.constant 0 : i32
    %c0_i32_0 = arith.constant 0 : i32
    %c0_i32_1 = arith.constant 0 : i32
    return %c0_i32, %c0_i32_0 : i32, i32
  }
  func.func @transform_8(%arg0: i32) -> (i32, i32) {
    %c0_i32 = arith.constant 0 : i32
    %c0_i32_0 = arith.constant 0 : i32
    %c0_i32_1 = arith.constant 0 : i32
    return %c0_i32, %c0_i32_0 : i32, i32
  }
  func.func @transform_9(%arg0: i32) -> (i32, i32) {
    %c0_i32 = arith.constant 0 : i32
    %c0_i32_0 = arith.constant 0 : i32
    return %arg0, %c0_i32 : i32, i32
  }
}

</mosaic_0001>

<bundles_post_ra>
// kernel: tpu_custom_call.1
= control target key start
LH: loop header
LB: loop body
LE: loop exit
PB: predicated region body
PF: predicated region fallthrough
CT: control target
= control target key end

     0   :  { %14 = vsyncpa [#allocation3], 0  ;;  %s1691_s0 = inlined_call_operand.hbm [shape: f32[16,8,32], index: 0, kind: input, shape index: {}]   ;;  %s1692_s1 = inlined_call_operand.vmem [shape: f32[1,32], index: 1, kind: input, shape index: {}]   ;;  %s1693_s2 = inlined_call_operand.vmem [shape: f32[1,32], index: 2, kind: input, shape index: {}]   ;;  %s1694_s3 = inlined_call_operand.hbm [shape: bf16[32,128], index: 3, kind: input, shape index: {}]   ;;  %s1695_s4 = inlined_call_operand.vmem [shape: f32[1,128], index: 4, kind: input, shape index: {}]   ;;  %s1696_s5 = inlined_call_operand.vmem [shape: f32[1,128], index: 5, kind: input, shape index: {}]   ;;  %s1697_s6 = inlined_call_operand.vmem [shape: f32[1,128], index: 6, kind: input, shape index: {}]   ;;  %s1698_s7 = inlined_call_operand.hbm [shape: bf16[128,128], index: 7, kind: input, shape index: {}]   ;;  %s1699_s8 = inlined_call_operand.vmem [shape: f32[1,128], index: 8, kind: input, shape index: {}]   ;;  %s1700_s9 = inlined_call_operand.hbm [shape: f32[16,128], index: 9, kind: output, shape index: {}]  }
   0x1   :  { %16 = vsyncpa [#allocation3 + $0x1], 0 }
   0x2   :  { %17 = vsyncpa [#allocation6], 0 }
   0x3   :  { %18 = vsyncpa [#allocation4], 0 }
   0x4   :  { %20 = vsyncpa [#allocation4 + $0x1], 0  ;;  %s1343_s30 = smov 0   ;;  %s1345_s10 = smov 0  }
   0x5   :  { %s1347_s11 = smov 0   ;;  %s1349_s12 = smov 0  }
   0x6 LB: > { %s1364_s13 = sadd.s32 4294967295, %s1281_s12   ;;  %s949_s14 = sadd.s32 4294967294, %s1281_s12   ;;  %s1281_s12 = sphi %s1349_s12, %s1723_s12   ;;  %s1277_s11 = sphi %s1347_s11, %s1722_s11   ;;  %s1273_s10 = sphi %s1345_s10, %s1721_s10   ;;  %s1269_s30 = sphi %s1343_s30, %s1720_s30  }
   0x7   : > { %p46_p0 = scmp.ne.s32.totalorder %s1273_s10, %s1269_s30  ;;  %p1701_p1 = scmp.eq.s32.totalorder %s1364_s13, 0 }
   0x8   : > { %p244_p3 = scmp.eq.s32.totalorder %s949_s14, 1  ;;  %p950_p5 = scmp.ge.s32.totalorder %s1281_s12, 1 }
   0x9   : > { %p1373_p4 = por %p1701_p1, %p46_p0  ;;  %p251_p7 = scmp.lt.s32.totalorder %s1281_s12, 3 }
   0xa   : > { %p1378_p6 = por %p244_p3, %p46_p0  ;;  %s1283_s18 = smov [#allocation5]  }
   0xb   : > { %s1705_s15 = scalar_select %p1373_p4, 1, 0 }
   0xc   : > { %s1706_s16 = scalar_select %p1378_p6, 1, 0 }
   0xd   : > { %p1383_p8 = pnand %p950_p5, %p251_p7  ;;  %s269_s19 = sshll.u32 %s1283_s18, 4  ;;  %s1387_s19 = int_to_ptr.vmem [resolvable:$true] %s269_s19 }
   0xe   : > { %1707 = sst [smem:[#allocation12_spill]] %s1706_s16  ;;  %s1284_s21 = smov [#allocation7]  }
   0xf   : > { %p1036_p9 = pneg %p1383_p8  ;;  %s291_s22 = sshll.u32 %s1284_s21, 4  ;;  %s1398_s22 = int_to_ptr.vmem [resolvable:$true] %s291_s22 }
  0x10   : > { %s1125_s25 = scalar_lea.hbm %s1694_s3, 256 }
  0x11   : > { %p1394_p11 = pnand %p1036_p9, %p1701_p1  ;;  %p1126_p12 = scmp.ne.s32.totalorder %s1694_s3, %s1125_s25 }
  0x12   : > { %p1132_p5 = scmp.lt.u32.totalorder %s1125_s25, %s1694_s3 }
  0x13   : > { %p1127_p13 = pneg %p1394_p11 }
  0x15   : > { %p1128_p0 = pnand %p1127_p13, %p1126_p12 }
  0x17   : > { %p1129_p3 = pneg %p1128_p0 }
  0x19   : > { %p1134_p7 = pnand %p1132_p5, %p1129_p3 }
  0x1b   : > { %1137 = shalt.err (!%p1134_p7)
}
  0x1c   : > { %s1138_s14 = scalar_lea.vmem %s1387_s19, 256  ;;  %p1146_p2 = scmp.lt.s32.totalorder %s1387_s19, %s1387_s19 }
  0x1d   : > { %p1139_p9 = scmp.ne.s32.totalorder %s1387_s19, %s1138_s14  ;;  %p1147_p12 = scmp.lt.s32.totalorder %s1138_s14, %s1138_s14 }
  0x1f   : > { %p1141_p10 = pnand %p1139_p9, %p1127_p13  ;;  %p1148_p0 = por %p1147_p12, %p1146_p2 }
  0x21   : > { %p1142_p1 = pneg %p1141_p10 }
  0x23   : > { %p1149_p6 = pnand %p1148_p0, %p1142_p1 }
  0x25   : > { %1152 = shalt.err (!%p1149_p6)
}
  0x26   : > { %s1285_s18 = smov 64   ;;  %s1286_s21 = smov 4  }
  0x27   : > { %1039 = dma.hbm_to_vmem [thread:$0]  (!%p1394_p11), %s1694_s3, 256, %s1387_s19, [#allocation6], %s1285_s18, %s1285_s18, %s1286_s21  }
  0x28   : > { %s1153_s27 = scalar_lea.hbm %s1698_s7, 1024 }
  0x29   : > { %p1154_p2 = scmp.ne.s32.totalorder %s1698_s7, %s1153_s27  ;;  %p1160_p10 = scmp.lt.u32.totalorder %s1153_s27, %s1698_s7 }
  0x2b   : > { %p1156_p1 = pnand %p1154_p2, %p1127_p13 }
  0x2d   : > { %p1157_p6 = pneg %p1156_p1 }
  0x2f   : > { %p1162_p3 = pnand %p1160_p10, %p1157_p6 }
  0x31   : > { %1165 = shalt.err (!%p1162_p3)
}
  0x32   : > { %s1166_s19 = scalar_lea.vmem %s1398_s22, 1024  ;;  %p1174_p12 = scmp.lt.s32.totalorder %s1398_s22, %s1398_s22 }
  0x33   : > { %p1167_p5 = scmp.ne.s32.totalorder %s1398_s22, %s1166_s19  ;;  %p1175_p0 = scmp.lt.s32.totalorder %s1166_s19, %s1166_s19 }
  0x35   : > { %p1169_p7 = pnand %p1167_p5, %p1127_p13  ;;  %p1176_p2 = por %p1175_p0, %p1174_p12 }
  0x37   : > { %p1170_p9 = pneg %p1169_p7 }
  0x39   : > { %p1177_p1 = pnand %p1176_p2, %p1170_p9 }
  0x3b   : > { %1180 = shalt.err (!%p1177_p1)
}
  0x3c   : > { %1042 = dma.hbm_to_vmem [thread:$0]  (!%p1394_p11), %s1698_s7, 1024, %s1398_s22, [#allocation6], %s1285_s18, %s1285_s18, %s1286_s21  }
  0x3d   : > { %s1453_s24 = sadd.s32 1, %s1281_s12   ;;  %s33_s20 = sadd.s32 1, %s1277_s11 }
  0x3e   : > { %s30_s25 = ssub.s32 %s1281_s12, %s1453_s24  ;;  %p40_p13 = scmp.ne.s32.totalorder %s1277_s11, %s1273_s10 }
  0x3f   : > { %p31_p6 = scmp.eq.s32.totalorder %s30_s25, 0  ;;  %p41_p10 = scmp.eq.s32.totalorder %s1281_s12, 0 }
  0x40   : > { %p1710_p3 = scmp.eq.s32.totalorder %s1364_s13, 1  ;;  %p1053_p7 = scmp.lt.s32.totalorder %s1281_s12, 2 }
  0x41   : > { %s1469_s27 = scalar_select %p31_p6, %s1277_s11, %s33_s20  }
  0x42   : > { %p1463_p5 = por %p1710_p3, %p40_p13  ;;  %p42_p9 = por %p41_p10, %p40_p13 }
  0x43   : > { %s308_s28 = sand.u32 1, %s1277_s11   ;;  %s983_s22 = sshll.u32 %s1281_s12, 10 }
  0x44   : > { %s1711_s26 = scalar_select %p1463_p5, 1, 0 }
  0x45   : > { %s954_s29 = sshll.u32 %s308_s28, 6  ;;  %s1476_s14 = scalar_lea.hbm %s1691_s0, %s983_s22 }
  0x46   : > { %s312_s19 = scalar_lea.vmem [#allocation2], %s954_s29  ;;  %p1480_p11 = pnand %p1053_p7, %p42_p9 }
  0x47   : > { %s319_s16 = sshll.u32 %s312_s19, 4  ;;  %s1484_s20 = scalar_lea.sflag [#allocation3], %s308_s28  ;;  %s1478_s16 = int_to_ptr.vmem [resolvable:$true] %s319_s16 }
  0x48   : > { %s1181_s25 = scalar_lea.hbm %s1476_s14, 1024  ;;  %p1183_p0 = pneg %p1480_p11 }
  0x49   : > { %p1182_p12 = scmp.ne.s32.totalorder %s1476_s14, %s1181_s25  ;;  %s1186_s18 = scalar_lea.hbm %s1691_s0, 2048 }
  0x4a   : > { %p1187_p13 = scmp.lt.u32.totalorder %s1476_s14, %s1691_s0  ;;  %p1188_p6 = scmp.lt.u32.totalorder %s1186_s18, %s1181_s25 }
  0x4b   : > { %p1184_p2 = pnand %p1183_p0, %p1182_p12  ;;  %p1190_p3 = scmp.lt.u32.totalorder %s1181_s25, %s1476_s14 }
  0x4c   : > { %p1189_p10 = por %p1188_p6, %p1187_p13 }
  0x4d   : > { %p1185_p1 = pneg %p1184_p2 }
  0x4e   : > { %p1191_p7 = por %p1190_p3, %p1189_p10 }
  0x50   : > { %p1192_p9 = pnand %p1191_p7, %p1185_p1 }
  0x52   : > { %1195 = shalt.err (!%p1192_p9)
}
  0x53   : > { %s1196_s28 = scalar_lea.vmem %s1478_s16, 1024  ;;  %s1287_s29 = smov [#allocation2]  }
  0x54   : > { %p1197_p12 = scmp.ne.s32.totalorder %s1478_s16, %s1196_s28  ;;  %s1201_s22 = sshll.u32 %s1287_s29, 4  ;;  %s1202_s22 = int_to_ptr.vmem [resolvable:$false] %s1201_s22 }
  0x55   : > { %s1203_s21 = scalar_lea.vmem %s1202_s22, 2048  ;;  %p1204_p4 = scmp.lt.s32.totalorder %s1478_s16, %s1202_s22 }
  0x56   : > { %p1199_p2 = pnand %p1197_p12, %p1183_p0  ;;  %p1205_p13 = scmp.lt.s32.totalorder %s1203_s21, %s1196_s28 }
  0x58   : > { %p1200_p5 = pneg %p1199_p2  ;;  %p1206_p6 = por %p1205_p13, %p1204_p4 }
  0x5a   : > { %p1207_p10 = pnand %p1206_p6, %p1200_p5 }
  0x5c   : > { %1210 = shalt.err (!%p1207_p10)
}
  0x5d   : > { %s1288_s25 = smov 128   ;;  %s1289_s18 = smov 8  }
  0x5e   : > { %1046 = dma.hbm_to_vmem [thread:$0]  (!%p1480_p11), %s1476_s14, 1024, %s1478_s16, %s1484_s20, %s1288_s25, %s1288_s25, %s1289_s18  }
  0x5f   : > { %331 = sbr.rel (%p1383_p8) target bundleno = 1221 (0x4c5), region = 56  ;;  %s1515_s19 = sand.u32 (!%p1383_p8), 1, %s1273_s10  }
  0x60   : > { %s958_s28 = sshll.u32 (!%p1383_p8), %s1515_s19, 6  ;;  %s334_s29 = scalar_lea.sflag (!%p1383_p8), [#allocation3], %s1515_s19 }
  0x61   : > { %s337_s22 = scalar_lea.vmem (!%p1383_p8), [#allocation2], %s958_s28  ;;  %p1713_p4 = scmp.ne.s32.totalorder (!%p1383_p8), %s1705_s15, 0 }
  0x66   : > { %1256 = dma.done.wait (%p1713_p4), %s334_s29, 1024  }
  0x67   : > { %1258 = vsyncadd (%p1713_p4), %s334_s29, 4294966272  ;;  %p1714_p5 = scmp.eq.s32.totalorder %s1364_s13, 0 }
  0x69   : > { %1260 = dma.done.wait (%p1714_p5), [#allocation6], 1280   ;;  %p1715_p11 = pmov %p1714_p5 }
  0x6a   : > { %vm390_vm0 = vcmask 261120   ;;  %v382_v0 = vld [vmem:[%s337_s22] sm:$0xff]  ;;  %v384_v1 = vld [vmem:[%s337_s22 + $0x10] sm:$0xff]  ;;  %v383_v2 = vld [vmem:[%s337_s22 + $0x8] sm:$0xff]  ;;  %v1290_v57 = vmov 0.0   ;;  %vm1291_vm1 = vmmov 0  }
  0x6b   : > { %1262 = vsyncadd (%p1715_p11), [#allocation6], 4294966016  ;;  %v391_v3 = vsel %vm390_vm0, %v382_v0, 0.0  ;;  %v397_v4 = vsel %vm390_vm0, %v384_v1, 0.0  ;;  %v385_v5 = vld [vmem:[%s337_s22 + $0x18] sm:$0xff]  ;;  %v386_v6 = vld [vmem:[%s337_s22 + $0x20] sm:$0xff]  ;;  %996 = vmatprep.subr.bf16.mxu0 %v1290_v57  ;;  %1000 = vmatprep.mubr.msk.bf16.mxu0 %vm1291_vm1, %v1290_v57 }
  0x6c   : > { %v387_v7 = vld [vmem:[%s337_s22 + $0x28] sm:$0xff]  ;;  %392 = vadd.xlane.f32.xlu0 %v391_v3  ;;  %398 = vadd.xlane.f32.xlu1 %v397_v4  ;;  %v394_v8 = vsel %vm390_vm0, %v383_v2, 0.0  ;;  %v400_v9 = vsel %vm390_vm0, %v385_v5, 0.0  ;;  %v403_v10 = vsel %vm390_vm0, %v386_v6, 0.0  ;;  %v388_v12 = vld [vmem:[%s337_s22 + $0x30] sm:$0xff]  ;;  %v389_v13 = vld [vmem:[%s337_s22 + $0x38] sm:$0xff] }
  0x6d   : > { %v406_v11 = vsel %vm390_vm0, %v387_v7, 0.0  ;;  %v409_v14 = vsel %vm390_vm0, %v388_v12, 0.0  ;;  %v412_v15 = vsel %vm390_vm0, %v389_v13, 0.0  ;;  %v1097_v56 = vld [vmem:[#allocation5] sm:$0xff]   ;;  %v1098_v58 = vld [vmem:[#allocation5 + $0x8] sm:$0xff]   ;;  %1004 = vmatprep.subr.bf16.mxu1 %v1290_v57  ;;  %1020 = vmatprep.mubr.msk.bf16.mxu1 %vm1291_vm1, %v1290_v57  ;;  %vm634_vm2 = vcmask 1041409  }
  0x6e   : > { %997 = vmatpush3.bf16.msra.mxu0 %v1097_v56  ;;  %vm636_vm3 = vcmask 1042434   ;;  %vm638_vm4 = vcmask 1043459   ;;  %vm640_vm5 = vcmask 1044484   ;;  %vm642_vm6 = vcmask 1045509   ;;  %s961_s29 = sshll.u32 %s1515_s19, 3  ;;  %s980_s17 = sshll.u32 %s1364_s13, 7 }
  0x6f   : > { %998 = vmatprep.subr.bf16.mxu0 %v1290_v57  ;;  %vm644_vm7 = vcmask 1046534   ;;  %vm646_vm8 = vcmask 1047559   ;;  %s379_s14 = scalar_lea.vmem [#allocation8], %s961_s29  ;;  %s1647_s21 = scalar_lea.hbm %s1700_s9, %s980_s17 }
  0x70   : > { %395 = vadd.xlane.f32.xlu0 %v394_v8  ;;  %401 = vadd.xlane.f32.xlu1 %v400_v9  ;;  %s860_s16 = sshll.u32 %s379_s14, 4  ;;  %s847_s25 = scalar_lea.sflag [#allocation4], %s1515_s19  ;;  %s1649_s16 = int_to_ptr.vmem [resolvable:$true] %s860_s16 }
  0x71   : > { %s1211_s13 = scalar_lea.vmem %s1649_s16, 128  ;;  %p1716_p0 = scmp.ne.s32.totalorder %s1711_s26, 0 }
  0x72   : > { %999 = vmatpush3.bf16.msra.mxu0 %v1098_v58  ;;  %p1212_p8 = scmp.ne.s32.totalorder %s1649_s16, %s1211_s13  ;;  %s1292_s18 = smov [#allocation8]  }
  0x73   : > { %s1215_s28 = sshll.u32 %s1292_s18, 4  ;;  %s1216_s28 = int_to_ptr.vmem [resolvable:$false] %s1215_s28 }
  0x74   : > { %404 = vadd.xlane.f32.xlu0 %v403_v10  ;;  %407 = vadd.xlane.f32.xlu1 %v406_v11  ;;  %p1213_p1 = pnand %p1212_p8, %p1716_p0  ;;  %s1217_s29 = scalar_lea.vmem %s1216_s28, 256 }
  0x75   : > { %p1218_p7 = scmp.lt.s32.totalorder %s1649_s16, %s1216_s28  ;;  %p1219_p9 = scmp.lt.s32.totalorder %s1217_s29, %s1211_s13 }
  0x76   : > { %p1214_p3 = pneg %p1213_p1 }
  0x77   : > { %p1220_p12 = por %p1219_p9, %p1218_p7 }
  0x78   : > { %410 = vadd.xlane.f32.xlu0 %v409_v14  ;;  %413 = vadd.xlane.f32.xlu1 %v412_v15  ;;  %v1583_v15 = vld [vmem:[%s1692_s1] ss:$0 sm:$0xff] }
  0x79   : > { %p1221_p2 = pnand %p1220_p12, %p1214_p3 }
  0xf9   : > { %v393_v16 = vpop.xlane.xlu0 %392  ;;  %v399_v17 = vpop.xlane.xlu1 %398 }
  0xfa   : > { %v416_v18 = vmul.f32 0.03125, %v393_v16  ;;  %v418_v19 = vmul.f32 0.03125, %v399_v17 }
  0xfc   : > { %v1535_v20 = vsub.f32 %v382_v0, %v416_v18  ;;  %v1537_v21 = vsub.f32 %v384_v1, %v418_v19 }
  0xfd   : > { %v396_v22 = vpop.xlane.xlu0 %395  ;;  %v402_v23 = vpop.xlane.xlu1 %401 }
  0xfe   : > { %v417_v24 = vmul.f32 0.03125, %v396_v22  ;;  %v419_v25 = vmul.f32 0.03125, %v402_v23  ;;  %v432_v26 = vmul.f32 %v1535_v20, %v1535_v20  ;;  %v434_v27 = vmul.f32 %v1537_v21, %v1537_v21  ;;  %v1589_v22 = vld [vmem:[%s1693_s2] ss:$0 sm:$0xff] }
 0x100   : > { %v1543_v28 = vsub.f32 %v383_v2, %v417_v24  ;;  %v1545_v29 = vsub.f32 %v385_v5, %v419_v25  ;;  %v440_v30 = vsel %vm390_vm0, %v432_v26, 0.0  ;;  %v446_v33 = vsel %vm390_vm0, %v434_v27, 0.0 }
 0x101   : > { %441 = vadd.xlane.f32.xlu0 %v440_v30  ;;  %v405_v31 = vpop.xlane.xlu0 %404  ;;  %v408_v32 = vpop.xlane.xlu1 %407 }
 0x102   : > { %v420_v34 = vmul.f32 0.03125, %v405_v31  ;;  %v421_v35 = vmul.f32 0.03125, %v408_v32  ;;  %v433_v36 = vmul.f32 %v1543_v28, %v1543_v28  ;;  %v435_v37 = vmul.f32 %v1545_v29, %v1545_v29 }
 0x104   : > { %v1553_v38 = vsub.f32 %v386_v6, %v420_v34  ;;  %v1555_v39 = vsub.f32 %v387_v7, %v421_v35  ;;  %v443_v40 = vsel %vm390_vm0, %v433_v36, 0.0  ;;  %v449_v43 = vsel %vm390_vm0, %v435_v37, 0.0 }
 0x105   : > { %447 = vadd.xlane.f32.xlu0 %v446_v33  ;;  %444 = vadd.xlane.f32.xlu1 %v443_v40  ;;  %v411_v41 = vpop.xlane.xlu0 %410  ;;  %v414_v42 = vpop.xlane.xlu1 %413 }
 0x106   : > { %v422_v44 = vmul.f32 0.03125, %v411_v41  ;;  %v423_v45 = vmul.f32 0.03125, %v414_v42  ;;  %v436_v46 = vmul.f32 %v1553_v38, %v1553_v38  ;;  %v437_v47 = vmul.f32 %v1555_v39, %v1555_v39 }
 0x108   : > { %v1563_v48 = vsub.f32 %v388_v12, %v422_v44  ;;  %v1565_v49 = vsub.f32 %v389_v13, %v423_v45  ;;  %v452_v50 = vsel %vm390_vm0, %v436_v46, 0.0  ;;  %v455_v51 = vsel %vm390_vm0, %v437_v47, 0.0 }
 0x109   : > { %450 = vadd.xlane.f32.xlu1 %v449_v43  ;;  %453 = vadd.xlane.f32.xlu0 %v452_v50 }
 0x10a   : > { %v438_v52 = vmul.f32 %v1563_v48, %v1563_v48  ;;  %v439_v53 = vmul.f32 %v1565_v49, %v1565_v49 }
 0x10c   : > { %v458_v54 = vsel %vm390_vm0, %v438_v52, 0.0  ;;  %v461_v55 = vsel %vm390_vm0, %v439_v53, 0.0 }
 0x10d   : > { %456 = vadd.xlane.f32.xlu1 %v455_v51  ;;  %459 = vadd.xlane.f32.xlu0 %v458_v54 }
 0x111   : > { %462 = vadd.xlane.f32.xlu1 %v461_v55 }
 0x18e   : > { %v442_v59 = vpop.xlane.xlu0 %441 }
 0x18f   : > { %v464_v60 = vmul.f32 0.03125, %v442_v59 }
 0x191   : > { %v472_v61 = vadd.f32 1e-05, %v464_v60 }
 0x192   : > { %v445_v62 = vpop.xlane.xlu1 %444  ;;  %v448_v63 = vpop.xlane.xlu0 %447 }
 0x193   : > { %1107 = vrsqrt.f32 %v472_v61  ;;  %v465_v0 = vmul.f32 0.03125, %v445_v62  ;;  %v466_v1 = vmul.f32 0.03125, %v448_v63 }
 0x195   : > { %v473_v2 = vadd.f32 1e-05, %v465_v0  ;;  %v474_v3 = vadd.f32 1e-05, %v466_v1 }
 0x196   : > { %v451_v4 = vpop.xlane.xlu1 %450  ;;  %v454_v5 = vpop.xlane.xlu0 %453 }
 0x197   : > { %1109 = vrsqrt.f32 %v473_v2  ;;  %v467_v6 = vmul.f32 0.03125, %v451_v4  ;;  %v468_v7 = vmul.f32 0.03125, %v454_v5 }
 0x198   : > { %1111 = vrsqrt.f32 %v474_v3 }
 0x199   : > { %v475_v8 = vadd.f32 1e-05, %v467_v6  ;;  %v476_v9 = vadd.f32 1e-05, %v468_v7 }
 0x19a   : > { %v457_v10 = vpop.xlane.xlu1 %456  ;;  %v460_v11 = vpop.xlane.xlu0 %459 }
 0x19b   : > { %1113 = vrsqrt.f32 %v475_v8  ;;  %v469_v12 = vmul.f32 0.03125, %v457_v10  ;;  %v470_v13 = vmul.f32 0.03125, %v460_v11 }
 0x19c   : > { %1115 = vrsqrt.f32 %v476_v9 }
 0x19d   : > { %v1108_v14 = vpop.eup %1107  ;;  %v477_v16 = vadd.f32 1e-05, %v469_v12  ;;  %v478_v17 = vadd.f32 1e-05, %v470_v13 }
 0x19e   : > { %v488_v18 = vmul.f32 %v1108_v14, %v1535_v20  ;;  %v463_v19 = vpop.xlane.xlu1 %462 }
 0x19f   : > { %1117 = vrsqrt.f32 %v477_v16  ;;  %v471_v23 = vmul.f32 0.03125, %v463_v19 }
 0x1a0   : > { %v503_v24 = vmul.f32 %v1583_v15, %v488_v18  ;;  %1119 = vrsqrt.f32 %v478_v17 }
 0x1a1   : > { %v1110_v25 = vpop.eup %1109  ;;  %v479_v26 = vadd.f32 1e-05, %v471_v23 }
 0x1a2   : > { %v1112_v27 = vpop.eup %1111  ;;  %v518_v30 = vadd.f32 %v1589_v22, %v503_v24  ;;  %v489_v31 = vmul.f32 %v1110_v25, %v1543_v28 }
 0x1a3   : > { %v490_v20 = vmul.f32 %v1112_v27, %v1537_v21  ;;  %1121 = vrsqrt.f32 %v479_v26 }
 0x1a4   : > { %v526_v32 = vmax.f32 %v518_v30, 0.0  ;;  %v504_v33 = vmul.f32 %v1583_v15, %v489_v31 }
 0x1a5   : > { %v1114_v34 = vpop.eup %1113  ;;  %v505_v35 = vmul.f32 %v1583_v15, %v490_v20 }
 0x1a6   : > { %v1116_v36 = vpop.eup %1115  ;;  %v534_v37 = vsel %vm390_vm0, %v526_v32, 0.0  ;;  %v519_v40 = vadd.f32 %v1589_v22, %v504_v33  ;;  %v491_v41 = vmul.f32 %v1114_v34, %v1545_v29 }
 0x1a7   : > { %v535_v42 = vrot.slane %v534_v37, 4  ;;  %v520_v43 = vadd.f32 %v1589_v22, %v505_v35  ;;  %v492_v28 = vmul.f32 %v1116_v36, %v1553_v38 }
 0x1a8   : > { %v527_v21 = vmax.f32 %v519_v40, 0.0  ;;  %v506_v44 = vmul.f32 %v1583_v15, %v491_v41 }
 0x1a9   : > { %v1118_v45 = vpop.eup %1117  ;;  %v536_v46 = vadd.f32 %v535_v42, %v534_v37  ;;  %v528_v47 = vmax.f32 %v520_v43, 0.0  ;;  %v507_v50 = vmul.f32 %v1583_v15, %v492_v28 }
 0x1aa   : > { %v1120_v51 = vpop.eup %1119  ;;  %v541_v52 = vsel %vm390_vm0, %v527_v21, 0.0  ;;  %v521_v53 = vadd.f32 %v1589_v22, %v506_v44  ;;  %v493_v29 = vmul.f32 %v1118_v45, %v1555_v39 }
 0x1ab   : > { %v537_v54 = vrot.slane %v536_v46, 2  ;;  %v542_v55 = vrot.slane %v541_v52, 4  ;;  %v548_v56 = vsel %vm390_vm0, %v528_v47, 0.0  ;;  %v522_v38 = vadd.f32 %v1589_v22, %v507_v50 }
 0x1ac   : > { %v549_v58 = vrot.slane %v548_v56, 4  ;;  %v529_v59 = vmax.f32 %v521_v53, 0.0  ;;  %v508_v60 = vmul.f32 %v1583_v15, %v493_v29  ;;  %v494_v61 = vmul.f32 %v1120_v51, %v1563_v48 }
 0x1ad   : > { %v538_v62 = vadd.f32 %v537_v54, %v536_v46  ;;  %v543_v63 = vadd.f32 %v542_v55, %v541_v52  ;;  %v530_v0 = vmax.f32 %v522_v38, 0.0  ;;  %v1122_v1 = vpop.eup %1121 }
 0x1ae   : > { %v550_v2 = vadd.f32 %v549_v58, %v548_v56  ;;  %v555_v3 = vsel %vm390_vm0, %v529_v59, 0.0  ;;  %v523_v39 = vadd.f32 %v1589_v22, %v508_v60  ;;  %v509_v4 = vmul.f32 %v1583_v15, %v494_v61 }
 0x1af   : > { %v539_v5 = vrot.slane %v538_v62, 1  ;;  %v544_v6 = vrot.slane %v543_v63, 2  ;;  %v556_v7 = vrot.slane %v555_v3, 4  ;;  %v562_v8 = vsel %vm390_vm0, %v530_v0, 0.0 }
 0x1b0   : > { %v551_v9 = vrot.slane %v550_v2, 2  ;;  %v563_v10 = vrot.slane %v562_v8, 4  ;;  %v531_v11 = vmax.f32 %v523_v39, 0.0  ;;  %v524_v48 = vadd.f32 %v1589_v22, %v509_v4 }
 0x1b1   : > { %v545_v12 = vadd.f32 %v544_v6, %v543_v63  ;;  %v557_v13 = vadd.f32 %v556_v7, %v555_v3  ;;  %v495_v14 = vmul.f32 %v1122_v1, %v1565_v49  ;;  %v540_v23 = vadd.f32 %v539_v5, %v538_v62 }
 0x1b2   : > { %v552_v16 = vadd.f32 %v551_v9, %v550_v2  ;;  %v564_v17 = vadd.f32 %v563_v10, %v562_v8  ;;  %v569_v18 = vsel %vm390_vm0, %v531_v11, 0.0  ;;  %v532_v19 = vmax.f32 %v524_v48, 0.0 }
 0x1b3   : > { %v546_v24 = vrot.slane %v545_v12, 1  ;;  %v558_v25 = vrot.slane %v557_v13, 2  ;;  %v570_v26 = vrot.slane %v569_v18, 4  ;;  %v510_v20 = vmul.f32 %v1583_v15, %v495_v14 }
 0x1b4   : > { %v553_v27 = vrot.slane %v552_v16, 1  ;;  %v565_v30 = vrot.slane %v564_v17, 2  ;;  %v576_v31 = vsel %vm390_vm0, %v532_v19, 0.0  ;;  %v591_v40 = vmul.f32 0.125, %v540_v23 }
 0x1b5   : > { %v547_v32 = vadd.f32 %v546_v24, %v545_v12  ;;  %v559_v33 = vadd.f32 %v558_v25, %v557_v13  ;;  %v571_v34 = vadd.f32 %v570_v26, %v569_v18  ;;  %v577_v36 = vrot.slane %v576_v31, 4 }
 0x1b6   : > { %v554_v35 = vadd.f32 %v553_v27, %v552_v16  ;;  %v566_v49 = vadd.f32 %v565_v30, %v564_v17  ;;  %v525_v37 = vadd.f32 %v1589_v22, %v510_v20  ;;  %v599_v53 = vpack.c.bf16 %v591_v40, %v591_v40  ;;  %v964_v30 = vld [vmem:[%s1695_s4] ss:$0 sm:$0xff] }
 0x1b7   : > { %v592_v41 = vmul.f32 0.125, %v547_v32  ;;  %v560_v42 = vrot.slane %v559_v33, 1  ;;  %v572_v43 = vrot.slane %v571_v34, 2  ;;  %v578_v44 = vadd.f32 %v577_v36, %v576_v31 }
 0x1b8   : > { %v533_v28 = vmax.f32 %v525_v37, 0.0  ;;  %v567_v21 = vrot.slane %v566_v49, 1  ;;  %v593_v45 = vmul.f32 0.125, %v554_v35  ;;  %v626_v63 = vunpack.c.l.b16 %v599_v53  ;;  %v1099_v35 = vld [vmem:[#allocation7] sm:$0xff]   ;;  %v969_v53 = vld [vmem:[%s1697_s6] ss:$0 sm:$0xff] }
 0x1b9   : > { %v600_v46 = vpack.c.bf16 %v592_v41, %v592_v41  ;;  %v561_v47 = vadd.f32 %v560_v42, %v559_v33  ;;  %v573_v50 = vadd.f32 %v572_v43, %v571_v34  ;;  %v579_v51 = vrot.slane %v578_v44, 2  ;;  %1005 = vmatpush3.bf16.msra.mxu1 %v1099_v35  ;;  %v1101_v42 = vld [vmem:[#allocation7 + $0x10] sm:$0xff]   ;;  %v1102_v43 = vld [vmem:[#allocation7 + $0x18] sm:$0xff]  }
 0x1ba   : > { %v568_v15 = vadd.f32 %v567_v21, %v566_v49  ;;  %v583_v52 = vsel %vm390_vm0, %v533_v28, 0.0  ;;  %v601_v38 = vpack.c.bf16 %v593_v45, %v593_v45  ;;  %v1100_v49 = vld [vmem:[#allocation7 + $0x8] sm:$0xff]   ;;  %1006 = vmatprep.subr.bf16.mxu1 %v1290_v57  ;;  %v1103_v28 = vld [vmem:[#allocation7 + $0x20] sm:$0xff]   ;;  %v1106_v45 = vld [vmem:[#allocation7 + $0x38] sm:$0xff]  }
 0x1bb   : > { %v574_v29 = vrot.slane %v573_v50, 1  ;;  %v584_v54 = vrot.slane %v583_v52, 4  ;;  %v594_v55 = vmul.f32 0.125, %v561_v47  ;;  %v580_v22 = vadd.f32 %v579_v51, %v578_v44  ;;  %v1104_v21 = vld [vmem:[#allocation7 + $0x28] sm:$0xff]   ;;  %v1105_v44 = vld [vmem:[#allocation7 + $0x30] sm:$0xff]  }
 0x1bc   : > { %v595_v56 = vmul.f32 0.125, %v568_v15  ;;  %v627_v58 = vunpack.c.l.b16 %v600_v46  ;;  %v628_v39 = vunpack.c.l.b16 %v601_v38  ;;  %v968_v51 = vld [vmem:[%s1696_s5] ss:$0 sm:$0xff] }
 0x1bd   : > { %v575_v59 = vadd.f32 %v574_v29, %v573_v50  ;;  %v585_v60 = vadd.f32 %v584_v54, %v583_v52  ;;  %v602_v61 = vpack.c.bf16 %v594_v55, %v594_v55  ;;  %v581_v62 = vrot.slane %v580_v22, 1  ;;  %1007 = vmatpush3.bf16.msra.mxu1 %v1100_v49 }
 0x1be   : > { %v603_v3 = vpack.c.bf16 %v595_v56, %v595_v56  ;;  %v635_v7 = vsel %vm634_vm2, %v627_v58, %v626_v63  ;;  %1008 = vmatprep.subr.bf16.mxu1 %v1290_v57 }
 0x1bf   : > { %v586_v0 = vrot.slane %v585_v60, 2  ;;  %v596_v1 = vmul.f32 0.125, %v575_v59  ;;  %v582_v2 = vadd.f32 %v581_v62, %v580_v22  ;;  %v629_v6 = vunpack.c.l.b16 %v602_v61  ;;  %v970_v22 = vld [vmem:[%s1699_s8] ss:$0 sm:$0xff] }
 0x1c0   : > { %v630_v11 = vunpack.c.l.b16 %v603_v3  ;;  %v637_v48 = vsel %vm636_vm3, %v628_v39, %v635_v7 }
 0x1c1   : > { %v587_v4 = vadd.f32 %v586_v0, %v585_v60  ;;  %v604_v5 = vpack.c.bf16 %v596_v1, %v596_v1  ;;  %v597_v8 = vmul.f32 0.125, %v582_v2  ;;  %v639_v14 = vsel %vm638_vm4, %v629_v6, %v637_v48  ;;  %1009 = vmatpush3.bf16.msra.mxu1 %v1101_v42 }
 0x1c2   : > { %v641_v18 = vsel %vm640_vm5, %v630_v11, %v639_v14  ;;  %1010 = vmatprep.subr.bf16.mxu1 %v1290_v57 }
 0x1c3   : > { %v588_v9 = vrot.slane %v587_v4, 1  ;;  %v605_v10 = vpack.c.bf16 %v597_v8, %v597_v8  ;;  %v631_v13 = vunpack.c.l.b16 %v604_v5 }
 0x1c5   : > { %v589_v12 = vadd.f32 %v588_v9, %v587_v4  ;;  %v632_v17 = vunpack.c.l.b16 %v605_v10  ;;  %v643_v23 = vsel %vm642_vm6, %v631_v13, %v641_v18  ;;  %1011 = vmatpush3.bf16.msra.mxu1 %v1102_v43 }
 0x1c6   : > { %1012 = vmatprep.subr.bf16.mxu1 %v1290_v57 }
 0x1c7   : > { %v598_v16 = vmul.f32 0.125, %v589_v12  ;;  %v645_v25 = vsel %vm644_vm7, %v632_v17, %v643_v23 }
 0x1c9   : > { %v606_v19 = vpack.c.bf16 %v598_v16, %v598_v16  ;;  %1013 = vmatpush3.bf16.msra.mxu1 %v1103_v28 }
 0x1ca   : > { %1014 = vmatprep.subr.bf16.mxu1 %v1290_v57 }
 0x1cb   : > { %v633_v24 = vunpack.c.l.b16 %v606_v19 }
 0x1cd   : > { %v647_v26 = vsel %vm646_vm8, %v633_v24, %v645_v25  ;;  %1015 = vmatpush3.bf16.msra.mxu1 %v1104_v21 }
 0x1ce   : > { %v648_v27 = vpack.c.b16 %v647_v26, %v647_v26  ;;  %1016 = vmatprep.subr.bf16.mxu1 %v1290_v57 }
 0x1d0   : > { %1001 = vmatmul.mubr.msk.bf16.vlgmr.msra.gmra.mrb[0].mxu0 %vm390_vm0, %v648_v27 }
 0x1d1   : > { %1017 = vmatpush3.bf16.msra.mxu1 %v1105_v44 }
 0x1d2   : > { %1018 = vmatprep.subr.bf16.mxu1 %v1290_v57 }
 0x1d5   : > { %1019 = vmatpush3.bf16.msra.mxu1 %v1106_v45 }
 0x2a3   : > { %v698_v31 = vpop.f32.mrb[0].mxu0 }
 0x2a4   : > { %v699_v20 = vadd.f32 %v964_v30, %v698_v31  ;;  %v1002_v32 = vpop.f32.mrb[1].mxu0 }
 0x2a5   : > { %v701_v33 = vpop.f32.mrb[2].mxu0 }
 0x2a6   : > { %704 = vadd.xlane.f32.xlu0 %v699_v20  ;;  %v1003_v34 = vpop.f32.mrb[3].mxu0 }
 0x333   : > { %v705_v36 = vpop.xlane.xlu0 %704 }
 0x334   : > { %v707_v37 = vmul.f32 0.0078125, %v705_v36 }
 0x336   : > { %v708_v40 = vsub.f32 %v699_v20, %v707_v37 }
 0x338   : > { %v709_v41 = vmul.f32 %v708_v40, %v708_v40 }
 0x33a   : > { %710 = vadd.xlane.f32.xlu1 %v709_v41 }
 0x3c7   : > { %v711_v46 = vpop.xlane.xlu1 %710 }
 0x3c8   : > { %v712_v47 = vmul.f32 0.0078125, %v711_v46 }
 0x3ca   : > { %v713_v50 = vadd.f32 1e-05, %v712_v47 }
 0x3cc   : > { %1123 = vrsqrt.f32 %v713_v50 }
 0x3d6   : > { %v1124_v15 = vpop.eup %1123 }
 0x3d7   : > { %v715_v52 = vmul.f32 %v1124_v15, %v708_v40 }
 0x3d9   : > { %v723_v29 = vmul.f32 %v968_v51, %v715_v52 }
 0x3db   : > { %v731_v54 = vadd.f32 %v969_v53, %v723_v29 }
 0x3dd   : > { %v732_v55 = vmax.f32 %v731_v54, 0.0 }
 0x3df   : > { %v733_v57 = vpack.c.bf16 %v732_v55, %v732_v55 }
 0x3e1   : > { %1021 = vmatmul.mubr.bf16.vlgmr.msra.gmra.mrb[0].mxu1 %v733_v57 }
 0x4b4   : > { %v839_v56 = vpop.f32.mrb[0].mxu1 }
 0x4b5   : > { %v840_v38 = vadd.f32 %v970_v22, %v839_v56  ;;  %v1022_v58 = vpop.f32.mrb[1].mxu1 }
 0x4b6   : > { %v842_v59 = vpop.f32.mrb[2].mxu1 }
 0x4b7   : > { %845 = vst [vmem:[%s379_s14] sm:$0xff] %v840_v38  ;;  %v1023_v60 = vpop.f32.mrb[3].mxu1 }
 0x4b8   : > { %1224 = shalt.err (!%p1221_p2)
}
 0x4b9   : > { %s1225_s19 = scalar_lea.hbm %s1647_s21, 128  ;;  %s1229_s17 = scalar_lea.hbm %s1700_s9, 256 }
 0x4ba   : > { %p1226_p13 = scmp.ne.s32.totalorder %s1647_s21, %s1225_s19  ;;  %p1230_p4 = scmp.lt.u32.totalorder %s1647_s21, %s1700_s9 }
 0x4bb   : > { %p1231_p5 = scmp.lt.u32.totalorder %s1229_s17, %s1225_s19  ;;  %p1233_p8 = scmp.lt.u32.totalorder %s1225_s19, %s1647_s21 }
 0x4bc   : > { %p1227_p6 = pnand %p1226_p13, %p1716_p0 }
 0x4bd   : > { %p1232_p11 = por %p1231_p5, %p1230_p4 }
 0x4be   : > { %p1228_p10 = pneg %p1227_p6 }
 0x4bf   : > { %p1234_p1 = por %p1233_p8, %p1232_p11 }
 0x4c1   : > { %p1235_p3 = pnand %p1234_p1, %p1228_p10 }
 0x4c3   : > { %1238 = shalt.err (!%p1235_p3)
}
 0x4c4   : > { %1034 = dma.vmem_to_hbm [thread:$0]  (%p1716_p0), %s1649_s16, 128, %s1647_s21, %s847_s25  }
 0x4c5 PF: > { %s1717_s20 = sld [smem:[#allocation12_spill]]  ;;  %s872_s13 = sand.u32 1, %s1269_s30  }
 0x4c6   : > { %p1719_p9 = scmp.ge.s32.totalorder %s1281_s12, 2  ;;  %s873_s18 = scalar_lea.sflag [#allocation4], %s872_s13 }
 0x4cb   : > { %p1718_p7 = scmp.ne.s32.totalorder %s1717_s20, 0 }
 0x4cd   : > { %p1048_p12 = pnand %p1719_p9, %p1718_p7 }
 0x4cf   : > { %1264 = dma.done.wait (!%p1048_p12), %s873_s18, 128  }
 0x4d0   : > { %1266 = vsyncadd (!%p1048_p12), %s873_s18, 4294967168  ;;  %p23_p2 = scmp.ge.s32.totalorder %s1453_s24, 4   ;;  %s1720_s30 = smov %s1273_s10 }
 0x4d1   : > { %s1721_s10 = smov %s1277_s11  ;;  %s1722_s11 = smov %s1469_s27 }
 0x4d2   : > { %s1723_s12 = smov %s1453_s24  ;;  %25 = sbr.rel (!%p23_p2) target bundleno = 6 (0x6), region = 109 }
 0x4d9   :  { %878 = vsyncpa [#allocation3], 1 }
 0x4da   :  { %880 = vsyncpa [#allocation3 + $0x1], 1 }
 0x4db   :  { %881 = vsyncpa [#allocation6], 1 }
 0x4dc   :  { %882 = vsyncpa [#allocation4], 1 }
 0x4dd   :  { %884 = vsyncpa [#allocation4 + $0x1], 1 }

</bundles_post_ra>
